<compile_context>
chip_gen: v5e
topology: v5e:2x2
jax: 0.10.0
libtpu: 0.0.40
codegen_flags: <defaults>
</compile_context>

<pallas_src>
import functools

import jax
import jax.numpy as jnp
from jax import lax
from jax.experimental import pallas as pl
from jax.experimental.pallas import tpu as pltpu


_FULL_UNROLL_MAX = 8  # fully unroll streaming loops up to this many groups


def _gelu_exact(x):
    # PyTorch nn.GELU() default is the exact erf formulation.
    return 0.5 * x * (1.0 + lax.erf(x * (1.0 / jnp.sqrt(2.0).astype(x.dtype))))


def _split_attention_kernel(x_ref, w1_ref, w2_ref, out_ref, *,
                            k, c, sp, cw, grp, n_groups, b_tile):
    # x_ref  : (B_TILE, k, NR, CW)  with NR*CW = h*w*c   (lane-dense layout)
    # w1_ref : (c, c)               mlp1 weight as (in, out)
    # w2_ref : (c, k*c)             mlp2 weight as (in, k*out)  (fused)
    # out_ref: (B_TILE, NR, CW)
    f32 = jnp.float32

    # ---- pass 1: a[bt, ch] = sum over k and spatial -------------------------
    # Only VPU adds inside the streaming loop; the cross-sublane reduce and
    # the SP lane fold are hoisted and run once per grid step.
    def p1_step(r0, acc):
        s = x_ref[:, 0, pl.ds(r0, grp), :].astype(f32)          # (B, G, CW)
        for ki in range(1, k):
            s = s + x_ref[:, ki, pl.ds(r0, grp), :].astype(f32)
        return acc + s

    acc0 = jnp.zeros((b_tile, grp, cw), f32)
    if n_groups <= _FULL_UNROLL_MAX:
        acc = acc0
        for gi in range(n_groups):
            acc = p1_step(gi * grp, acc)
    else:
        acc = lax.fori_loop(
            0, n_groups,
            lambda gi, a: p1_step(pl.multiple_of(gi * grp, grp), a),
            acc0, unroll=2)

    s2 = jnp.sum(acc, axis=1)                                    # (B, CW), once
    wcur = cw
    while wcur > c:                                              # lane fold SP*c -> c
        half = wcur // 2
        s2 = s2[:, :half] + s2[:, half:]
        wcur = half
    a = s2                                                       # (B, c)

    # ---- tiny MLP + softmax over k (fused mlp2 matmul) ----------------------
    z = _gelu_exact(jnp.dot(a, w1_ref[...].astype(f32),
                            preferred_element_type=f32))         # (B, c)
    hat = jnp.dot(z, w2_ref[...].astype(f32),
                  preferred_element_type=f32)                    # (B, k*c)
    parts = [hat[:, ki * c:(ki + 1) * c] for ki in range(k)]
    m = parts[0]
    for p in parts[1:]:
        m = jnp.maximum(m, p)
    es = [jnp.exp(p - m) for p in parts]
    den = es[0]
    for e in es[1:]:
        den = den + e
    inv = pl.reciprocal(den, approx=False)                       # (B, c)
    # bar_a replicated across the SP lane-folded positions and pre-broadcast
    # to the full (B, G, CW) chunk shape ONCE (hoisted out of the pass-2 loop).
    bar = [jnp.broadcast_to(jnp.tile(e * inv, (1, sp))[:, None, :],
                            (b_tile, grp, cw)) for e in es]

    # ---- pass 2: out = sum_k bar_a[k] * x[k] --------------------------------
    def p2_step(r0):
        o = bar[0] * x_ref[:, 0, pl.ds(r0, grp), :].astype(f32)
        for ki in range(1, k):
            o = o + bar[ki] * x_ref[:, ki, pl.ds(r0, grp), :].astype(f32)
        out_ref[:, pl.ds(r0, grp), :] = o.astype(out_ref.dtype)

    if n_groups <= _FULL_UNROLL_MAX:
        for gi in range(n_groups):
            p2_step(gi * grp)
    else:
        @pl.loop(0, n_groups)
        def _(gi):
            p2_step(pl.multiple_of(gi * grp, grp))


def _largest_pow2_spatial_fold(n, c, lane_target=512):
    """Fold SP spatial positions into the lane axis: SP | n, SP*c <= target."""
    sp = 1
    while (n % (sp * 2) == 0) and (sp * 2 * c <= lane_target):
        sp *= 2
    return sp


def _pick_b_tile(b, per_batch_bytes, cw,
                 block_target=8 * 1024 * 1024, chunk_elems=8192):
    """Largest divisor of b with block <= target, bounded vreg chunks, and a
    grid of >= 2 steps (even when possible) so both v7x TensorCores are fed
    and BlockSpec double-buffering stays active."""
    def ok(cand):
        return (b % cand == 0
                and cand * per_batch_bytes <= block_target
                and cand * cw <= chunk_elems)
    cands = [cand for cand in range(b, 0, -1) if ok(cand)]
    if not cands:
        return 1
    even = [cand for cand in cands if (b // cand) >= 2 and (b // cand) % 2 == 0]
    if even:
        return even[0]
    multi = [cand for cand in cands if (b // cand) >= 2]
    if multi:
        return multi[0]
    return cands[0]


def _pick_group(nr, b_tile, cw, chunk_elems=8192):
    """Rows read per streaming step (prefer 8 for sublane-dense loads)."""
    gmax = max(1, min(8, nr, chunk_elems // max(1, b_tile * cw)))
    for cand in range(gmax, 0, -1):
        if nr % cand == 0:
            return cand
    return 1


def split_attention(x_all, w1, w2):
    """x_all: (b, k, h, w, c); w1: (c, c) [out, in]; w2: (k*c, c) [out, in]."""
    b, k, h, w, c = x_all.shape
    n = h * w
    itemsize = jnp.dtype(x_all.dtype).itemsize

    # Lane-dense layout: minor dim CW = SP*c (>=128 whenever n, c allow).
    sp = _largest_pow2_spatial_fold(n, c)
    cw = sp * c
    nr = n // sp

    b_tile = _pick_b_tile(b, k * n * c * itemsize, cw)
    grp = _pick_group(nr, b_tile, cw)
    n_groups = nr // grp

    x_r = x_all.reshape(b, k, nr, cw)                         # free (row-major)
    w1_t = jnp.transpose(w1)                                  # (in=c, out=c)
    w2_f = jnp.transpose(w2)                                  # (in=c, out=k*c)

    kernel = functools.partial(
        _split_attention_kernel, k=k, c=c, sp=sp, cw=cw,
        grp=grp, n_groups=n_groups, b_tile=b_tile)

    in_block = b_tile * k * nr * cw * itemsize
    out_block = b_tile * nr * cw * itemsize
    w_bytes = (w1.size + w2.size) * jnp.dtype(w1.dtype).itemsize
    # Double-buffered blocks + weights + headroom, capped at 48 MiB so it
    # always fits v7x's 64 MiB physical VMEM (v5e/v6e have 128 MiB).
    # TODO(synk): for per-batch blocks > ~12 MiB (b_tile==1, very large h*w),
    # split the nr axis with an inner emit_pipeline instead of one VMEM block.
    vmem_limit = int(max(24 << 20,
                         min(48 << 20,
                             2 * (in_block + out_block) + w_bytes + (4 << 20))))

    cost = pl.CostEstimate(
        flops=int(2 * b * c * c + 2 * b * c * (k * c) + 3 * b * k * n * c),
        transcendentals=int(b * c + b * k * c),
        bytes_accessed=int((b * k * n * c + b * n * c) * itemsize + w_bytes),
    )

    out = pl.pallas_call(
        kernel,
        out_shape=jax.ShapeDtypeStruct((b, nr, cw), x_all.dtype),
        grid_spec=pltpu.PrefetchScalarGridSpec(
            num_scalar_prefetch=0,
            grid=(b // b_tile,),
            in_specs=[
                pl.BlockSpec((b_tile, k, nr, cw), lambda i: (i, 0, 0, 0)),
                pl.BlockSpec((c, c), lambda i: (0, 0)),
                pl.BlockSpec((c, k * c), lambda i: (0, 0)),
            ],
            out_specs=pl.BlockSpec((b_tile, nr, cw), lambda i: (i, 0, 0)),
        ),
        compiler_params=pltpu.CompilerParams(
            dimension_semantics=("parallel",),
            vmem_limit_bytes=vmem_limit),
        cost_estimate=cost,
    )(x_r, w1_t, w2_f)
    return out.reshape(b, h, w, c)


def _reference(x_all, w1, w2):
    b, k, h, w, c = x_all.shape
    x = x_all.reshape(b, k, -1, c).astype(jnp.float32)
    a = jnp.sum(jnp.sum(x, axis=1), axis=1)                   # (b, c)
    z = _gelu_exact(a @ w1.T.astype(jnp.float32))
    hat = (z @ w2.T.astype(jnp.float32)).reshape(b, k, c)
    bar = jax.nn.softmax(hat, axis=1)
    out = jnp.sum(bar[:, :, None, :] * x, axis=1)
    return out.reshape(b, h, w, c).astype(x_all.dtype)


if __name__ == "__main__":
    # Small shapes consistent with the module: batch=2, k=3 splits, 8x8, c=32.
    b, k, h, w, c = 2, 3, 8, 8, 32
    key = jax.random.PRNGKey(0)
    kx, k1, k2 = jax.random.split(key, 3)

    x_all = jax.random.normal(kx, (b, k, h, w, c), dtype=jnp.float32)
    # PyTorch nn.Linear weight shapes: (out, in), no bias.
    w1 = jax.random.normal(k1, (c, c), dtype=jnp.float32) * 0.05
    w2 = jax.random.normal(k2, (c * k, c), dtype=jnp.float32) * 0.05

    out = jax.block_until_ready(split_attention(x_all, w1, w2))
    ref = _reference(x_all, w1, w2)
    assert out.shape == (b, h, w, c)
    assert jnp.allclose(out, ref, atol=1e-4, rtol=1e-4), float(
        jnp.max(jnp.abs(out - ref)))
    print("KERNEL_OK")
</pallas_src>

<mosaic_0001>
module attributes {stable_mosaic.version = 11 : i64} {
  func.func @_split_attention_kernel(%arg0: i32, %arg1: memref<1x3x4x512xf32, #tpu.memory_space<vmem>>, %arg2: memref<32x32xf32, #tpu.memory_space<vmem>>, %arg3: memref<32x96xf32, #tpu.memory_space<vmem>>, %arg4: memref<1x4x512xf32, #tpu.memory_space<vmem>>) attributes {dimension_semantics = [#tpu.dimension_semantics<parallel>], iteration_bounds = array<i64: 2>, scalar_prefetch = 0 : i64, scratch_operands = 0 : i64, tpu.core_type = #tpu.core_type<tc>, window_params = [{transform_indices = @transform_0, window_bounds = array<i64: 1, 3, 4, 512>}, {pipeline_mode = #tpu.pipeline_mode<synchronous>, transform_indices = @transform_1, window_bounds = array<i64: 32, 32>}, {pipeline_mode = #tpu.pipeline_mode<synchronous>, transform_indices = @transform_2, window_bounds = array<i64: 32, 96>}, {transform_indices = @transform_3, window_bounds = array<i64: 1, 4, 512>}]} {
    %cst = arith.constant 0.000000e+00 : f32
    %0 = vector.broadcast %cst : f32 to vector<1x4x512xf32>
    %c0 = arith.constant 0 : index
    %c0_0 = arith.constant 0 : index
    %c0_1 = arith.constant 0 : index
    %c0_2 = arith.constant 0 : index
    %1 = vector.load %arg1[%c0, %c0_0, %c0_1, %c0_2] : memref<1x3x4x512xf32, #tpu.memory_space<vmem>>, vector<1x1x4x512xf32>
    %2 = vector.shape_cast %1 : vector<1x1x4x512xf32> to vector<1x4x512xf32>
    %c0_3 = arith.constant 0 : index
    %c1 = arith.constant 1 : index
    %c0_4 = arith.constant 0 : index
    %c0_5 = arith.constant 0 : index
    %3 = vector.load %arg1[%c0_3, %c1, %c0_4, %c0_5] : memref<1x3x4x512xf32, #tpu.memory_space<vmem>>, vector<1x1x4x512xf32>
    %4 = vector.shape_cast %3 : vector<1x1x4x512xf32> to vector<1x4x512xf32>
    %5 = arith.addf %2, %4 : vector<1x4x512xf32>
    %c0_6 = arith.constant 0 : index
    %c2 = arith.constant 2 : index
    %c0_7 = arith.constant 0 : index
    %c0_8 = arith.constant 0 : index
    %6 = vector.load %arg1[%c0_6, %c2, %c0_7, %c0_8] : memref<1x3x4x512xf32, #tpu.memory_space<vmem>>, vector<1x1x4x512xf32>
    %7 = vector.shape_cast %6 : vector<1x1x4x512xf32> to vector<1x4x512xf32>
    %8 = arith.addf %5, %7 : vector<1x4x512xf32>
    %9 = arith.addf %0, %8 : vector<1x4x512xf32>
    %cst_9 = arith.constant dense<0.000000e+00> : vector<1x512xf32>
    %10 = vector.multi_reduction <add>, %9, %cst_9 [1] : vector<1x4x512xf32> to vector<1x512xf32>
    %11 = vector.extract_strided_slice %10 {offsets = [0, 0], sizes = [1, 256], strides = [1, 1]} : vector<1x512xf32> to vector<1x256xf32>
    %12 = vector.extract_strided_slice %10 {offsets = [0, 256], sizes = [1, 256], strides = [1, 1]} : vector<1x512xf32> to vector<1x256xf32>
    %13 = arith.addf %11, %12 : vector<1x256xf32>
    %14 = vector.extract_strided_slice %13 {offsets = [0, 0], sizes = [1, 128], strides = [1, 1]} : vector<1x256xf32> to vector<1x128xf32>
    %15 = vector.extract_strided_slice %13 {offsets = [0, 128], sizes = [1, 128], strides = [1, 1]} : vector<1x256xf32> to vector<1x128xf32>
    %16 = arith.addf %14, %15 : vector<1x128xf32>
    %17 = vector.extract_strided_slice %16 {offsets = [0, 0], sizes = [1, 64], strides = [1, 1]} : vector<1x128xf32> to vector<1x64xf32>
    %18 = vector.extract_strided_slice %16 {offsets = [0, 64], sizes = [1, 64], strides = [1, 1]} : vector<1x128xf32> to vector<1x64xf32>
    %19 = arith.addf %17, %18 : vector<1x64xf32>
    %20 = vector.extract_strided_slice %19 {offsets = [0, 0], sizes = [1, 32], strides = [1, 1]} : vector<1x64xf32> to vector<1x32xf32>
    %21 = vector.extract_strided_slice %19 {offsets = [0, 32], sizes = [1, 32], strides = [1, 1]} : vector<1x64xf32> to vector<1x32xf32>
    %22 = arith.addf %20, %21 : vector<1x32xf32>
    %c0_10 = arith.constant 0 : index
    %c0_11 = arith.constant 0 : index
    %23 = vector.load %arg2[%c0_10, %c0_11] : memref<32x32xf32, #tpu.memory_space<vmem>>, vector<32x32xf32>
    %cst_12 = arith.constant dense<0.000000e+00> : vector<1x32xf32>
    %24 = tpu.matmul %22, %23, %cst_12 {dimension_numbers = #tpu.dot_dimension_numbers<[1], [0], [0], [1], [0, 0, 1, 1], [], []>} : vector<1x32xf32>, vector<32x32xf32>, vector<1x32xf32> -> vector<1x32xf32>
    %cst_13 = arith.constant 5.000000e-01 : f32
    %25 = vector.broadcast %cst_13 : f32 to vector<1x32xf32>
    %26 = arith.mulf %25, %24 : vector<1x32xf32>
    %cst_14 = arith.constant 2.000000e+00 : f32
    %27 = math.sqrt %cst_14 : f32
    %cst_15 = arith.constant 1.000000e+00 : f32
    %28 = arith.divf %cst_15, %27 : f32
    %29 = vector.broadcast %28 : f32 to vector<1x32xf32>
    %30 = arith.mulf %24, %29 : vector<1x32xf32>
    %31 = math.erf %30 : vector<1x32xf32>
    %cst_16 = arith.constant 1.000000e+00 : f32
    %32 = vector.broadcast %cst_16 : f32 to vector<1x32xf32>
    %33 = arith.addf %32, %31 : vector<1x32xf32>
    %34 = arith.mulf %26, %33 : vector<1x32xf32>
    %c0_17 = arith.constant 0 : index
    %c0_18 = arith.constant 0 : index
    %35 = vector.load %arg3[%c0_17, %c0_18] : memref<32x96xf32, #tpu.memory_space<vmem>>, vector<32x96xf32>
    %cst_19 = arith.constant dense<0.000000e+00> : vector<1x96xf32>
    %36 = tpu.matmul %34, %35, %cst_19 {dimension_numbers = #tpu.dot_dimension_numbers<[1], [0], [0], [1], [0, 0, 1, 1], [], []>} : vector<1x32xf32>, vector<32x96xf32>, vector<1x96xf32> -> vector<1x96xf32>
    %37 = vector.extract_strided_slice %36 {offsets = [0, 0], sizes = [1, 32], strides = [1, 1]} : vector<1x96xf32> to vector<1x32xf32>
    %38 = vector.extract_strided_slice %36 {offsets = [0, 32], sizes = [1, 32], strides = [1, 1]} : vector<1x96xf32> to vector<1x32xf32>
    %39 = vector.extract_strided_slice %36 {offsets = [0, 64], sizes = [1, 32], strides = [1, 1]} : vector<1x96xf32> to vector<1x32xf32>
    %40 = arith.maximumf %37, %38 : vector<1x32xf32>
    %41 = arith.maximumf %40, %39 : vector<1x32xf32>
    %42 = arith.subf %37, %41 : vector<1x32xf32>
    %43 = math.exp %42 : vector<1x32xf32>
    %44 = arith.subf %38, %41 : vector<1x32xf32>
    %45 = math.exp %44 : vector<1x32xf32>
    %46 = arith.subf %39, %41 : vector<1x32xf32>
    %47 = math.exp %46 : vector<1x32xf32>
    %48 = arith.addf %43, %45 : vector<1x32xf32>
    %49 = arith.addf %48, %47 : vector<1x32xf32>
    %50 = tpu.reciprocal %49 : vector<1x32xf32> -> vector<1x32xf32>
    %51 = arith.mulf %43, %50 : vector<1x32xf32>
    %52 = tpu.concatenate %51, %51, %51, %51, %51, %51, %51, %51, %51, %51, %51, %51, %51, %51, %51, %51 in 1 : vector<1x32xf32>, vector<1x32xf32>, vector<1x32xf32>, vector<1x32xf32>, vector<1x32xf32>, vector<1x32xf32>, vector<1x32xf32>, vector<1x32xf32>, vector<1x32xf32>, vector<1x32xf32>, vector<1x32xf32>, vector<1x32xf32>, vector<1x32xf32>, vector<1x32xf32>, vector<1x32xf32>, vector<1x32xf32> -> vector<1x512xf32>
    %53 = vector.shape_cast %52 : vector<1x512xf32> to vector<1x1x512xf32>
    %54 = vector.shape_cast %53 : vector<1x1x512xf32> to vector<1x1x512xf32>
    %55 = vector.broadcast %54 : vector<1x1x512xf32> to vector<1x4x512xf32>
    %56 = arith.mulf %45, %50 : vector<1x32xf32>
    %57 = tpu.concatenate %56, %56, %56, %56, %56, %56, %56, %56, %56, %56, %56, %56, %56, %56, %56, %56 in 1 : vector<1x32xf32>, vector<1x32xf32>, vector<1x32xf32>, vector<1x32xf32>, vector<1x32xf32>, vector<1x32xf32>, vector<1x32xf32>, vector<1x32xf32>, vector<1x32xf32>, vector<1x32xf32>, vector<1x32xf32>, vector<1x32xf32>, vector<1x32xf32>, vector<1x32xf32>, vector<1x32xf32>, vector<1x32xf32> -> vector<1x512xf32>
    %58 = vector.shape_cast %57 : vector<1x512xf32> to vector<1x1x512xf32>
    %59 = vector.shape_cast %58 : vector<1x1x512xf32> to vector<1x1x512xf32>
    %60 = vector.broadcast %59 : vector<1x1x512xf32> to vector<1x4x512xf32>
    %61 = arith.mulf %47, %50 : vector<1x32xf32>
    %62 = tpu.concatenate %61, %61, %61, %61, %61, %61, %61, %61, %61, %61, %61, %61, %61, %61, %61, %61 in 1 : vector<1x32xf32>, vector<1x32xf32>, vector<1x32xf32>, vector<1x32xf32>, vector<1x32xf32>, vector<1x32xf32>, vector<1x32xf32>, vector<1x32xf32>, vector<1x32xf32>, vector<1x32xf32>, vector<1x32xf32>, vector<1x32xf32>, vector<1x32xf32>, vector<1x32xf32>, vector<1x32xf32>, vector<1x32xf32> -> vector<1x512xf32>
    %63 = vector.shape_cast %62 : vector<1x512xf32> to vector<1x1x512xf32>
    %64 = vector.shape_cast %63 : vector<1x1x512xf32> to vector<1x1x512xf32>
    %65 = vector.broadcast %64 : vector<1x1x512xf32> to vector<1x4x512xf32>
    %c0_20 = arith.constant 0 : index
    %c0_21 = arith.constant 0 : index
    %c0_22 = arith.constant 0 : index
    %c0_23 = arith.constant 0 : index
    %66 = vector.load %arg1[%c0_20, %c0_21, %c0_22, %c0_23] : memref<1x3x4x512xf32, #tpu.memory_space<vmem>>, vector<1x1x4x512xf32>
    %67 = vector.shape_cast %66 : vector<1x1x4x512xf32> to vector<1x4x512xf32>
    %68 = arith.mulf %55, %67 : vector<1x4x512xf32>
    %c0_24 = arith.constant 0 : index
    %c1_25 = arith.constant 1 : index
    %c0_26 = arith.constant 0 : index
    %c0_27 = arith.constant 0 : index
    %69 = vector.load %arg1[%c0_24, %c1_25, %c0_26, %c0_27] : memref<1x3x4x512xf32, #tpu.memory_space<vmem>>, vector<1x1x4x512xf32>
    %70 = vector.shape_cast %69 : vector<1x1x4x512xf32> to vector<1x4x512xf32>
    %71 = arith.mulf %60, %70 : vector<1x4x512xf32>
    %72 = arith.addf %68, %71 : vector<1x4x512xf32>
    %c0_28 = arith.constant 0 : index
    %c2_29 = arith.constant 2 : index
    %c0_30 = arith.constant 0 : index
    %c0_31 = arith.constant 0 : index
    %73 = vector.load %arg1[%c0_28, %c2_29, %c0_30, %c0_31] : memref<1x3x4x512xf32, #tpu.memory_space<vmem>>, vector<1x1x4x512xf32>
    %74 = vector.shape_cast %73 : vector<1x1x4x512xf32> to vector<1x4x512xf32>
    %75 = arith.mulf %65, %74 : vector<1x4x512xf32>
    %76 = arith.addf %72, %75 : vector<1x4x512xf32>
    %c0_32 = arith.constant 0 : index
    %c0_33 = arith.constant 0 : index
    %c0_34 = arith.constant 0 : index
    %77 = vector.load %arg4[%c0_32, %c0_33, %c0_34] : memref<1x4x512xf32, #tpu.memory_space<vmem>>, vector<1x4x512xf32>
    tpu.vector_store %arg4[%c0_32, %c0_33, %c0_34], %76 {strides = array<i32>} : memref<1x4x512xf32, #tpu.memory_space<vmem>>, vector<1x4x512xf32>,
    return
  }
  func.func @transform_0(%arg0: i32) -> (i32, i32, i32, i32) {
    %c0_i32 = arith.constant 0 : i32
    %c0_i32_0 = arith.constant 0 : i32
    %c0_i32_1 = arith.constant 0 : i32
    %c0_i32_2 = arith.constant 0 : i32
    return %arg0, %c0_i32, %c0_i32_0, %c0_i32_1 : i32, i32, i32, i32
  }
  func.func @transform_1(%arg0: i32) -> (i32, i32) {
    %c0_i32 = arith.constant 0 : i32
    %c0_i32_0 = arith.constant 0 : i32
    %c0_i32_1 = arith.constant 0 : i32
    return %c0_i32, %c0_i32_0 : i32, i32
  }
  func.func @transform_2(%arg0: i32) -> (i32, i32) {
    %c0_i32 = arith.constant 0 : i32
    %c0_i32_0 = arith.constant 0 : i32
    %c0_i32_1 = arith.constant 0 : i32
    return %c0_i32, %c0_i32_0 : i32, i32
  }
  func.func @transform_3(%arg0: i32) -> (i32, i32, i32) {
    %c0_i32 = arith.constant 0 : i32
    %c0_i32_0 = arith.constant 0 : i32
    %c0_i32_1 = arith.constant 0 : i32
    return %arg0, %c0_i32, %c0_i32_0 : i32, i32, i32
  }
}

</mosaic_0001>

<bundles_post_ra>
// kernel: tpu_custom_call.1
= control target key start
LH: loop header
LB: loop body
LE: loop exit
PB: predicated region body
PF: predicated region fallthrough
CT: control target
= control target key end

     0   :  { %8 = vsyncpa [#allocation3], 0  ;;  %s1167_s0 = inlined_call_operand.hbm [shape: f32[2,3,4,512], index: 0, kind: input, shape index: {}]   ;;  %s1168_s1 = inlined_call_operand.hbm [shape: f32[32,32], index: 1, kind: input, shape index: {}]   ;;  %s1169_s2 = inlined_call_operand.hbm [shape: f32[32,96], index: 2, kind: input, shape index: {}]   ;;  %s1170_s3 = inlined_call_operand.hbm [shape: f32[2,4,512], index: 3, kind: output, shape index: {}]  }
   0x1   :  { %10 = vsyncpa [#allocation3 + $0x1], 0 }
   0x2   :  { %11 = vsyncpa [#allocation6], 0 }
   0x3   :  { %12 = vsyncpa [#allocation4], 0 }
   0x4   :  { %14 = vsyncpa [#allocation4 + $0x1], 0  ;;  %s973_s12 = smov 0   ;;  %s975_s13 = smov 0  }
   0x5   :  { %s977_s14 = smov 0   ;;  %s979_s15 = smov 0  }
   0x6 LB: > { %s994_s16 = sadd.s32 4294967295, %s942_s15   ;;  %s672_s17 = sadd.s32 4294967294, %s942_s15   ;;  %s942_s15 = sphi %s979_s15, %s1180_s15   ;;  %s938_s14 = sphi %s977_s14, %s1179_s14   ;;  %s934_s13 = sphi %s975_s13, %s1178_s13   ;;  %s930_s12 = sphi %s973_s12, %s1177_s12  }
   0x7   : > { %p40_p0 = scmp.ne.s32.totalorder %s934_s13, %s930_s12  ;;  %p41_p1 = scmp.eq.s32.totalorder %s994_s16, 0 }
   0x8   : > { %p106_p2 = scmp.eq.s32.totalorder %s994_s16, 1  ;;  %p112_p3 = scmp.eq.s32.totalorder %s672_s17, 1 }
   0x9   : > { %p1003_p4 = por %p41_p1, %p40_p0  ;;  %p673_p5 = scmp.ge.s32.totalorder %s942_s15, 1 }
   0xa   : > { %p1008_p6 = por %p112_p3, %p40_p0  ;;  %p119_p7 = scmp.lt.s32.totalorder %s942_s15, 3 }
   0xb   : > { %s130_s22 = sshll.u32 %s1168_s1, 4  ;;  %s944_s24 = smov [#allocation5]   ;;  %s131_s22 = int_to_ptr.hbm [resolvable:$true] %s130_s22 }
   0xc   : > { %p1016_p8 = pnand %p673_p5, %p119_p7  ;;  %s132_s25 = sshll.u32 %s944_s24, 4  ;;  %s133_s25 = int_to_ptr.vmem [resolvable:$true] %s132_s25 }
   0xd   : > { %s144_s28 = sshll.u32 %s1169_s2, 4  ;;  %s945_s29 = smov 128   ;;  %s145_s28 = int_to_ptr.hbm [resolvable:$true] %s144_s28 }
   0xe   : > { %p710_p9 = pneg %p1016_p8  ;;  %s946_s30 = smov 8  }
   0xf   : > { %s947_s4 = smov [#allocation7]   ;;  %s1029_s6 = sadd.s32 1, %s942_s15  }
  0x10   : > { %p711_p10 = pnand %p710_p9, %p41_p1  ;;  %s146_s5 = sshll.u32 %s947_s4, 4  ;;  %s147_s5 = int_to_ptr.vmem [resolvable:$true] %s146_s5 }
  0x11   : > { %s27_s7 = sadd.s32 1, %s938_s14  ;;  %s24_s8 = ssub.s32 %s942_s15, %s1029_s6 }
  0x12   : > { %713 = dma.hbm_to_vmem [thread:$0]  (!%p711_p10), %s131_s22, 512, %s133_s25, [#allocation6], %s945_s29, %s945_s29, %s946_s30  }
  0x13   : > { %716 = dma.hbm_to_vmem [thread:$0]  (!%p711_p10), %s145_s28, 512, %s147_s5, [#allocation6], %s945_s29, %s945_s29, %s946_s30  }
  0x14   : > { %p34_p12 = scmp.ne.s32.totalorder %s938_s14, %s934_s13  ;;  %p25_p13 = scmp.eq.s32.totalorder %s24_s8, 0 }
  0x15   : > { %p35_p0 = scmp.eq.s32.totalorder %s942_s15, 0  ;;  %p727_p5 = scmp.lt.s32.totalorder %s942_s15, 2 }
  0x16   : > { %p1039_p3 = por %p106_p2, %p34_p12  ;;  %s160_s11 = sand.u32 1, %s938_s14  }
  0x17   : > { %s1045_s10 = scalar_select %p25_p13, %s938_s14, %s27_s7  }
  0x18   : > { %p36_p7 = por %p35_p0, %p34_p12  ;;  %s695_s17 = smul.u32 48, %s160_s11 }
  0x19   : > { %s696_s20 = smul.u32 48, %s942_s15  ;;  %s161_s29 = scalar_lea.sflag [#allocation3], %s160_s11 }
  0x1a   : > { %p1049_p9 = pnand %p727_p5, %p36_p7  ;;  %s164_s26 = scalar_lea.vmem [#allocation2], %s695_s17 }
  0x1b   : > { %s169_s25 = scalar_lea.hbm %s1167_s0, %s696_s20  ;;  %s172_s27 = sshll.u32 %s164_s26, 4  ;;  %s173_s27 = int_to_ptr.vmem [resolvable:$true] %s172_s27 }
  0x1c   : > { %s170_s28 = sshll.u32 %s169_s25, 4  ;;  %p846_p10 = pneg %p1049_p9  ;;  %s171_s28 = int_to_ptr.hbm [resolvable:$true] %s170_s28 }
  0x1d   : > { %s842_s30 = sshra.s32 %s171_s28, 4  ;;  %s849_s8 = scalar_lea.hbm %s1167_s0, 96  ;;  %s843_s30 = int_to_ptr.hbm [resolvable:$true] %s842_s30 }
  0x1e   : > { %s844_s4 = scalar_lea.hbm %s843_s30, 48  ;;  %p850_p0 = scmp.lt.s32.totalorder %s843_s30, %s1167_s0 }
  0x1f   : > { %p845_p2 = scmp.ne.s32.totalorder %s843_s30, %s844_s4  ;;  %p851_p5 = scmp.lt.s32.totalorder %s849_s8, %s844_s4 }
  0x21   : > { %p847_p12 = pnand %p846_p10, %p845_p2  ;;  %p852_p7 = por %p851_p5, %p850_p0 }
  0x23   : > { %p848_p13 = pneg %p847_p12 }
  0x25   : > { %p853_p11 = pnand %p852_p7, %p848_p13 }
  0x27   : > { %856 = shalt.err (!%p853_p11)
}
  0x28   : > { %s948_s11 = smov 256   ;;  %s949_s17 = smov 16  }
  0x29   : > { %720 = dma.hbm_to_vmem [thread:$0]  (!%p1049_p9), %s171_s28, 768, %s173_s27, %s161_s29, %s948_s11, %s948_s11, %s949_s17  }
  0x2a   : > { %184 = sbr.rel (%p1016_p8) target bundleno = 1237 (0x4d5), region = 32  ;;  %s1069_s24 = sand.u32 (!%p1016_p8), 1, %s934_s13  }
  0x2b   : > { %s697_s25 = smul.u32 (!%p1016_p8), 48, %s1069_s24  ;;  %s187_s26 = scalar_lea.sflag (!%p1016_p8), [#allocation3], %s1069_s24 }
  0x2d   : > { %s190_s30 = scalar_lea.vmem (!%p1016_p8), [#allocation2], %s697_s25 }
  0x2f   : > { %917 = dma.done.wait (%p1003_p4), %s187_s26, 768  }
  0x30   : > { %919 = vsyncadd (%p1003_p4), %s187_s26, 4294966528 }
  0x31   : > { %921 = dma.done.wait (%p41_p1), [#allocation6], 1024  }
  0x32   : > { %923 = vsyncadd (%p41_p1), [#allocation6], 4294966272  ;;  %v224_v0 = vld [vmem:[%s190_s30] sm:$0xff]  ;;  %v225_v1 = vld [vmem:[%s190_s30 + $0x8] sm:$0xff]  ;;  %vm251_vm0 = vcmask 1043456   ;;  %s950_s18 = smov 64  }
  0x33   : > { %v1081_v2 = vld [vmem:[%s190_s30 + $0x10] sm:$0xff]  ;;  %v1083_v3 = vld [vmem:[%s190_s30 + $0x18] sm:$0xff]  ;;  %v1086_v5 = vld [vmem:[%s190_s30 + $0x20] sm:$0xff]  ;;  %s951_s23 = smov 96   ;;  %vm297_vm1 = vcmask 261120   ;;  %s952_s21 = smov 32  }
  0x34   : > { %v229_v4 = vadd.f32 %v1081_v2, %v224_v0  ;;  %v1088_v6 = vld [vmem:[%s190_s30 + $0x28] sm:$0xff]  ;;  %v230_v7 = vadd.f32 %v1083_v3, %v225_v1  ;;  %v295_v46 = vld [vmem:[#allocation5 + $0x10] sm:$0xff]  ;;  %v293_v50 = vld [vmem:[#allocation5] sm:$0xff]  ;;  %vm453_vm10 = vcmask 523264   ;;  %vm455_vm11 = vcmask 785408   ;;  %s681_s27 = sshll.u32 %s1069_s24, 4 }
  0x35   : > { %v296_v45 = vld [vmem:[#allocation5 + $0x18] sm:$0xff]  ;;  %v294_v47 = vld [vmem:[#allocation5 + $0x8] sm:$0xff]  ;;  %s694_s28 = sshll.u32 %s994_s16, 4  ;;  %s223_s5 = scalar_lea.vmem [#allocation8], %s681_s27 }
  0x36   : > { %v234_v8 = vadd.f32 %v1086_v5, %v229_v4  ;;  %v235_v9 = vadd.f32 %v1088_v6, %v230_v7  ;;  %313 = vmatpush.msra.mxu0 %v296_v45  ;;  %v367_v7 = vld [vmem:[#allocation7 + $0x10] sm:$0xff]  ;;  %s578_s4 = scalar_lea.hbm %s1170_s3, %s694_s28  ;;  %s580_s7 = sshll.u32 %s223_s5, 4  ;;  %s581_s7 = int_to_ptr.vmem [resolvable:$true] %s580_s7 }
  0x37   : > { %s582_s8 = sshll.u32 %s578_s4, 4  ;;  %s567_s22 = scalar_lea.sflag [#allocation4], %s1069_s24  ;;  %s583_s8 = int_to_ptr.hbm [resolvable:$true] %s582_s8 }
  0x38   : > { %240 = vst [vmem:[#allocation1] ss:$2 sm:$0xff] %v234_v8  ;;  %314 = vmatpush.msra.mxu0 %v295_v46  ;;  %s886_s20 = sshra.s32 %s583_s8, 4  ;;  %s892_s26 = scalar_lea.hbm %s1170_s3, 32  ;;  %s887_s20 = int_to_ptr.hbm [resolvable:$true] %s886_s20 }
  0x39   : > { %242 = vst [vmem:[#allocation1 + $0x10] ss:$2 sm:$0xff] %v235_v9  ;;  %v366_v9 = vld [vmem:[#allocation7 + $0x8] sm:$0xff]  ;;  %s888_s11 = scalar_lea.hbm %s887_s20, 16  ;;  %p893_p11 = scmp.lt.s32.totalorder %s887_s20, %s1170_s3 }
  0x3a   : > { %315 = vmatpush.msra.mxu0 %v294_v47  ;;  %p889_p1 = scmp.ne.s32.totalorder %s887_s20, %s888_s11  ;;  %p894_p9 = scmp.lt.s32.totalorder %s892_s26, %s888_s11 }
  0x3c   : > { %316 = vmatpush.msra.mxu0 %v293_v50  ;;  %p890_p4 = pnand %p889_p1, %p1039_p3  ;;  %p895_p2 = por %p894_p9, %p893_p11 }
  0x3e   : > { %p891_p8 = pneg %p890_p4 }
  0x3f   : > { %v243_v10 = vld.sshfl [vmem:[#allocation1] sm:$0xff pattern:$0x75316420]  ;;  %v244_v11 = vld.sshfl [vmem:[#allocation1 + $0x8] sm:$0xff pattern:$0x75316420] }
  0x40   : > { %v245_v12 = vld.sshfl [vmem:[#allocation1 + $0x10] sm:$0xff pattern:$0x75316420]  ;;  %v246_v13 = vld.sshfl [vmem:[#allocation1 + $0x18] sm:$0xff pattern:$0x75316420]  ;;  %p896_p10 = pnand %p895_p2, %p891_p8 }
  0x41   : > { %v252_v14 = vsel %vm251_vm0, %v243_v10, 0.0  ;;  %v259_v15 = vsel %vm251_vm0, %v244_v11, 0.0  ;;  %v266_v16 = vsel %vm251_vm0, %v245_v12, 0.0  ;;  %v273_v17 = vsel %vm251_vm0, %v246_v13, 0.0  ;;  %497 = vst [vmem:[#allocation1] ss:$2 sm:$0xff] %v224_v0 }
  0x42   : > { %v253_v18 = vrot.slane %v252_v14, 4  ;;  %v260_v19 = vrot.slane %v259_v15, 4  ;;  %v267_v20 = vrot.slane %v266_v16, 4  ;;  %v274_v21 = vrot.slane %v273_v17, 4  ;;  %499 = vst [vmem:[#allocation1 + $0x10] ss:$2 sm:$0xff] %v225_v1 }
  0x43   : > { %v368_v0 = vld [vmem:[#allocation7 + $0x18] sm:$0xff]  ;;  %v365_v11 = vld [vmem:[#allocation7] sm:$0xff] }
  0x44   : > { %v254_v22 = vadd.f32 %v253_v18, %v252_v14  ;;  %v261_v23 = vadd.f32 %v260_v19, %v259_v15  ;;  %v268_v24 = vadd.f32 %v267_v20, %v266_v16  ;;  %v275_v25 = vadd.f32 %v274_v21, %v273_v17  ;;  %384 = vmatpush.msra.mxu1 %v368_v0 }
  0x46   : > { %v255_v26 = vrot.slane %v254_v22, 2  ;;  %v262_v27 = vrot.slane %v261_v23, 2  ;;  %v269_v28 = vrot.slane %v268_v24, 2  ;;  %v276_v29 = vrot.slane %v275_v25, 2  ;;  %385 = vmatpush.msra.mxu1 %v367_v7 }
  0x48   : > { %v256_v30 = vadd.f32 %v255_v26, %v254_v22  ;;  %v263_v31 = vadd.f32 %v262_v27, %v261_v23  ;;  %v270_v32 = vadd.f32 %v269_v28, %v268_v24  ;;  %v277_v33 = vadd.f32 %v276_v29, %v275_v25  ;;  %386 = vmatpush.msra.mxu1 %v366_v9  ;;  %v501_v9 = vld.sshfl [vmem:[#allocation1 + $0x8] sm:$0xff pattern:$0x75316420] }
  0x4a   : > { %v257_v34 = vrot.slane %v256_v30, 1  ;;  %v264_v35 = vrot.slane %v263_v31, 1  ;;  %v271_v36 = vrot.slane %v270_v32, 1  ;;  %v278_v37 = vrot.slane %v277_v33, 1  ;;  %387 = vmatpush.msra.mxu1 %v365_v11 }
  0x4b   : > { %v503_v11 = vld.sshfl [vmem:[#allocation1 + $0x18] sm:$0xff pattern:$0x75316420] }
  0x4c   : > { %v258_v38 = vadd.f32 %v257_v34, %v256_v30  ;;  %v265_v39 = vadd.f32 %v264_v35, %v263_v31  ;;  %v272_v40 = vadd.f32 %v271_v36, %v270_v32  ;;  %v279_v41 = vadd.f32 %v278_v37, %v277_v33 }
  0x4e   : > { %v280_v42 = vadd.f32 %v272_v40, %v258_v38  ;;  %v281_v43 = vadd.f32 %v279_v41, %v265_v39 }
  0x50   : > { %v282_v44 = vadd.f32 %v281_v43, %v280_v42 }
  0x52   : > { %284 = vrot.lane.b32.xlu0 %v282_v44, %s950_s18 }
  0xc4   : > { %v285_v48 = vpop.permute.xlu0 %284 }
  0xc5   : > { %v287_v49 = vadd.f32 %v285_v48, %v282_v44 }
  0xc7   : > { %289 = vrot.lane.b32.xlu0 %v287_v49, %s951_s23 }
 0x139   : > { %v290_v51 = vpop.permute.xlu0 %289 }
 0x13a   : > { %v292_v52 = vadd.f32 %v290_v51, %v287_v49 }
 0x13c   : > { %686 = vmatmul.msk.f32.vlgmr.msra.gmra.mxu0 %vm297_vm1, %v292_v52 }
 0x1b9   : > { %v318_v53 = vpop.f32.mrf.mxu0 }
 0x1ba   : > { %v322_v54 = vmul.f32 0.70710677, %v318_v53  ;;  %v321_v34 = vmul.f32 0.5, %v318_v53 }
 0x1bc   : > { %v323_v55 = vmul.f32 %v322_v54, %v322_v54 }
 0x1be   : > { %v324_v56 = vmin.f32 %v323_v55, 16.0 }
 0x1c0   : > { %v325_v57 = vmul.f32 2.1237322e-06, %v324_v56  ;;  %v336_v58 = vmul.f32 3.8918573e-05, %v324_v56 }
 0x1c2   : > { %v326_v59 = vadd.f32 0.00028619796, %v325_v57  ;;  %v337_v60 = vadd.f32 0.001143296, %v336_v58 }
 0x1c4   : > { %v327_v61 = vmul.f32 %v326_v59, %v324_v56  ;;  %v338_v62 = vmul.f32 %v337_v60, %v324_v56 }
 0x1c6   : > { %v339_v63 = vadd.f32 0.014752088, %v338_v62  ;;  %v328_v1 = vadd.f32 0.0036580483, %v327_v61 }
 0x1c8   : > { %v340_v4 = vmul.f32 %v339_v63, %v324_v56  ;;  %v329_v10 = vmul.f32 %v328_v1, %v324_v56 }
 0x1ca   : > { %v341_v8 = vadd.f32 0.112945676, %v340_v4  ;;  %v330_v14 = vadd.f32 0.05243302, %v329_v10 }
 0x1cb   : > { %v502_v10 = vld.sshfl [vmem:[#allocation1 + $0x10] sm:$0xff pattern:$0x75316420] }
 0x1cc   : > { %v342_v12 = vmul.f32 %v341_v8, %v324_v56  ;;  %v331_v17 = vmul.f32 %v330_v14, %v324_v56  ;;  %v500_v8 = vld.sshfl [vmem:[#allocation1] sm:$0xff pattern:$0x75316420]  ;;  %516 = vst [vmem:[#allocation1 + $0x10] ss:$2 sm:$0xff] %v1083_v3 }
 0x1cd   : > { %514 = vst [vmem:[#allocation1] ss:$2 sm:$0xff] %v1081_v2 }
 0x1ce   : > { %v343_v13 = vadd.f32 0.4994258, %v342_v12  ;;  %v332_v18 = vadd.f32 0.18741608, %v331_v17 }
 0x1d0   : > { %v344_v15 = vmul.f32 %v343_v13, %v324_v56  ;;  %v333_v20 = vmul.f32 %v332_v18, %v324_v56 }
 0x1d2   : > { %v345_v16 = vadd.f32 1.0, %v344_v15  ;;  %v334_v24 = vadd.f32 1.1283791, %v333_v20 }
 0x1d3   : > { %v519_v17 = vld.sshfl [vmem:[#allocation1 + $0x10] sm:$0xff pattern:$0x75316420]  ;;  %v520_v3 = vld.sshfl [vmem:[#allocation1 + $0x18] sm:$0xff pattern:$0x75316420] }
 0x1d4   : > { %772 = vrcp.f32 %v345_v16  ;;  %v357_v23 = vand.u32 2147483648, %v345_v16  ;;  %v355_v26 = vand.u32 2147483647, %v345_v16  ;;  %vm351_vm3 = vweird.f32 %v345_v16  ;;  %v518_v2 = vld.sshfl [vmem:[#allocation1 + $0x8] sm:$0xff pattern:$0x75316420] }
 0x1d5   : > { %v335_v29 = vmul.f32 %v334_v24, %v322_v54  ;;  %537 = vst [vmem:[#allocation1 + $0x10] ss:$2 sm:$0xff] %v1088_v6 }
 0x1d6   : > { %v358_v28 = vor.u32 1.1754944e-38, %v357_v23  ;;  %vm356_vm5 = vcmp.eq.f32.partialorder %v355_v26, 8.507059e+37 }
 0x1da   : > { %v773_v19 = vpop.eup %772 }
 0x1db   : > { %v347_v21 = vmul.f32 %v773_v19, %v345_v16  ;;  %vm352_vm2 = vweird.f32 %v773_v19  ;;  %v517_v16 = vld.sshfl [vmem:[#allocation1] sm:$0xff pattern:$0x75316420] }
 0x1dc   : > { %vm353_vm4 = vmor %vm351_vm3, %vm352_vm2  ;;  %535 = vst [vmem:[#allocation1] ss:$2 sm:$0xff] %v1086_v5 }
 0x1dd   : > { %v348_v22 = vsub.f32 1.0, %v347_v21 }
 0x1df   : > { %v349_v25 = vmul.f32 %v773_v19, %v348_v22 }
 0x1e1   : > { %v350_v27 = vadd.f32 %v773_v19, %v349_v25 }
 0x1e3   : > { %v354_v30 = vsel %vm353_vm4, %v773_v19, %v350_v27 }
 0x1e4   : > { %v359_v31 = vsel %vm356_vm5, %v358_v28, %v354_v30 }
 0x1e5   : > { %v360_v32 = vmul.f32 %v359_v31, %v335_v29 }
 0x1e7   : > { %v687_v33 = vclamps-f32 %v360_v32, 1.0 }
 0x1e9   : > { %v363_v35 = vadd.f32 1.0, %v687_v33 }
 0x1eb   : > { %v364_v36 = vmul.f32 %v363_v35, %v321_v34 }
 0x1ed   : > { %688 = vmatmul.msk.f32.vlgmr.msra.gmra.mxu1 %vm297_vm1, %v364_v36  ;;  %v538_v36 = vld.sshfl [vmem:[#allocation1] sm:$0xff pattern:$0x75316420] }
 0x26a   : > { %v389_v37 = vpop.f32.mrf.mxu1 }
 0x26b   : > { %393 = vrot.lane.b32.xlu1 %v389_v37, %s951_s23 }
 0x273   : > { %397 = vrot.lane.b32.xlu1 %v389_v37, %s950_s18 }
 0x2dd   : > { %v394_v38 = vpop.permute.xlu1 %393 }
 0x2de   : > { %v396_v39 = vmax.f32 %v389_v37, %v394_v38 }
 0x2e5   : > { %v398_v40 = vpop.permute.xlu1 %397 }
 0x2e6   : > { %v400_v41 = vmax.f32 %v396_v39, %v398_v40 }
 0x2e8   : > { %405 = vrot.lane.b32.xlu2 %v400_v41, %s952_s21  ;;  %v401_v50 = vsub.f32 %v389_v37, %v400_v41 }
 0x2ea   : > { %v402_v51 = vmul.f32 1.442695, %v401_v50 }
 0x2f0   : > { %411 = vrot.lane.b32.xlu2 %v400_v41, %s950_s18  ;;  %v540_v41 = vld.sshfl [vmem:[#allocation1 + $0x10] sm:$0xff pattern:$0x75316420] }
 0x342   : > { %v406_v42 = vpop.permute.xlu2 %405 }
 0x343   : > { %v408_v43 = vsub.f32 %v389_v37, %v406_v42  ;;  %v541_v42 = vld.sshfl [vmem:[#allocation1 + $0x18] sm:$0xff pattern:$0x75316420] }
 0x345   : > { %v409_v44 = vmul.f32 1.442695, %v408_v43 }
 0x347   : > { %774 = vpow2.f32 %v409_v44 }
 0x34a   : > { %v412_v45 = vpop.permute.xlu2 %411 }
 0x34b   : > { %v414_v46 = vsub.f32 %v389_v37, %v412_v45  ;;  %v539_v37 = vld.sshfl [vmem:[#allocation1 + $0x8] sm:$0xff pattern:$0x75316420] }
 0x34d   : > { %v775_v47 = vpop.eup %774  ;;  %v415_v48 = vmul.f32 1.442695, %v414_v46 }
 0x34e   : > { %418 = vrot.lane.b32.xlu0 %v775_v47, %s951_s23 }
 0x34f   : > { %776 = vpow2.f32 %v415_v48 }
 0x350   : > { %778 = vpow2.f32 %v402_v51 }
 0x355   : > { %v777_v49 = vpop.eup %776 }
 0x356   : > { %423 = vrot.lane.b32.xlu1 %v777_v49, %s950_s18  ;;  %v779_v53 = vpop.eup %778 }
 0x3c0   : > { %v419_v52 = vpop.permute.xlu0 %418 }
 0x3c1   : > { %v421_v54 = vadd.f32 %v779_v53, %v419_v52 }
 0x3c8   : > { %v424_v55 = vpop.permute.xlu1 %423 }
 0x3c9   : > { %v426_v56 = vadd.f32 %v424_v55, %v421_v54 }
 0x3cb   : > { %780 = vrcp.f32 %v426_v56  ;;  %v438_v60 = vand.u32 2147483648, %v426_v56  ;;  %v436_v62 = vand.u32 2147483647, %v426_v56  ;;  %vm432_vm7 = vweird.f32 %v426_v56 }
 0x3cd   : > { %v439_v0 = vor.u32 1.1754944e-38, %v438_v60  ;;  %vm437_vm9 = vcmp.eq.f32.partialorder %v436_v62, 8.507059e+37 }
 0x3d1   : > { %v781_v57 = vpop.eup %780 }
 0x3d2   : > { %v428_v58 = vmul.f32 %v781_v57, %v426_v56  ;;  %vm433_vm6 = vweird.f32 %v781_v57 }
 0x3d3   : > { %vm434_vm8 = vmor %vm432_vm7, %vm433_vm6 }
 0x3d4   : > { %v429_v59 = vsub.f32 1.0, %v428_v58 }
 0x3d6   : > { %v430_v61 = vmul.f32 %v781_v57, %v429_v59 }
 0x3d8   : > { %v431_v63 = vadd.f32 %v781_v57, %v430_v61 }
 0x3da   : > { %v435_v1 = vsel %vm434_vm8, %v781_v57, %v431_v63 }
 0x3db   : > { %v440_v4 = vsel %vm437_vm9, %v439_v0, %v435_v1 }
 0x3dc   : > { %477 = vrot.lane.b32.xlu0 %v440_v4, %s950_s18  ;;  %v441_v7 = vmul.f32 %v779_v53, %v440_v4  ;;  %459 = vrot.lane.b32.xlu2 %v440_v4, %s952_s21 }
 0x3de   : > { %443 = vrot.lane.b32.xlu1 %v441_v7, %s952_s21 }
 0x3e4   : > { %449 = vrot.lane.b32.xlu2 %v441_v7, %s951_s23  ;;  %446 = vrot.lane.b32.xlu0 %v441_v7, %s950_s18 }
 0x436   : > { %v460_v12 = vpop.permute.xlu2 %459 }
 0x437   : > { %v462_v13 = vmul.f32 %v775_v47, %v460_v12 }
 0x439   : > { %464 = vrot.lane.b32.xlu2 %v462_v13, %s951_s23  ;;  %470 = vrot.lane.b32.xlu0 %v462_v13, %s950_s18 }
 0x43a   : > { %467 = vrot.lane.b32.xlu1 %v462_v13, %s952_s21 }
 0x43e   : > { %v450_v18 = vpop.permute.xlu2 %449 }
 0x44e   : > { %v478_v14 = vpop.permute.xlu0 %477 }
 0x44f   : > { %v480_v15 = vmul.f32 %v777_v49, %v478_v14 }
 0x450   : > { %v444_v19 = vpop.permute.xlu1 %443 }
 0x451   : > { %485 = vrot.lane.b32.xlu2 %v480_v15, %s951_s23  ;;  %488 = vrot.lane.b32.xlu0 %v480_v15, %s952_s21  ;;  %v452_v26 = vsel %vm297_vm1, %v441_v7, %v444_v19 }
 0x452   : > { %482 = vrot.lane.b32.xlu1 %v480_v15, %s950_s18 }
 0x456   : > { %v447_v20 = vpop.permute.xlu0 %446 }
 0x457   : > { %v454_v5 = vsel %vm453_vm10, %v452_v26, %v447_v20 }
 0x458   : > { %v456_v27 = vsel %vm455_vm11, %v454_v5, %v450_v18 }
 0x459   : > { %v457_v29 = vperm.slane %v456_v27, 0 }
 0x45b   : > { %v509_v39 = vmul.f32 %v501_v9, %v457_v29  ;;  %v511_v40 = vmul.f32 %v503_v11, %v457_v29  ;;  %v508_v47 = vmul.f32 %v500_v8, %v457_v29  ;;  %v510_v48 = vmul.f32 %v502_v10, %v457_v29 }
 0x493   : > { %v465_v21 = vpop.permute.xlu2 %464 }
 0x494   : > { %v473_v23 = vsel %vm297_vm1, %v465_v21, %v462_v13 }
 0x4ab   : > { %v471_v24 = vpop.permute.xlu0 %470  ;;  %v486_v30 = vpop.permute.xlu2 %485 }
 0x4ac   : > { %v468_v22 = vpop.permute.xlu1 %467 }
 0x4ad   : > { %v474_v25 = vsel %vm453_vm10, %v473_v23, %v468_v22 }
 0x4ae   : > { %v475_v6 = vsel %vm455_vm11, %v474_v25, %v471_v24 }
 0x4af   : > { %v476_v28 = vperm.slane %v475_v6, 0 }
 0x4b1   : > { %v526_v32 = vmul.f32 %v518_v2, %v476_v28  ;;  %v528_v33 = vmul.f32 %v520_v3, %v476_v28  ;;  %v525_v44 = vmul.f32 %v517_v16, %v476_v28  ;;  %v527_v45 = vmul.f32 %v519_v17, %v476_v28 }
 0x4b3   : > { %v530_v49 = vadd.f32 %v526_v32, %v509_v39  ;;  %v532_v50 = vadd.f32 %v528_v33, %v511_v40  ;;  %v529_v55 = vadd.f32 %v525_v44, %v508_v47  ;;  %v531_v56 = vadd.f32 %v527_v45, %v510_v48 }
 0x4c3   : > { %v489_v35 = vpop.permute.xlu0 %488 }
 0x4c4   : > { %v483_v31 = vpop.permute.xlu1 %482 }
 0x4c5   : > { %v491_v34 = vsel %vm297_vm1, %v483_v31, %v486_v30 }
 0x4c6   : > { %v492_v38 = vsel %vm453_vm10, %v491_v34, %v480_v15 }
 0x4c7   : > { %v493_v43 = vsel %vm455_vm11, %v492_v38, %v489_v35 }
 0x4c8   : > { %v494_v46 = vperm.slane %v493_v43, 0 }
 0x4ca   : > { %v546_v51 = vmul.f32 %v538_v36, %v494_v46  ;;  %v547_v52 = vmul.f32 %v539_v37, %v494_v46  ;;  %v548_v53 = vmul.f32 %v540_v41, %v494_v46  ;;  %v549_v54 = vmul.f32 %v541_v42, %v494_v46 }
 0x4cc   : > { %v551_v57 = vadd.f32 %v547_v52, %v530_v49  ;;  %v553_v58 = vadd.f32 %v549_v54, %v532_v50  ;;  %v550_v59 = vadd.f32 %v546_v51, %v529_v55  ;;  %v552_v60 = vadd.f32 %v548_v53, %v531_v56 }
 0x4ce   : > { %v558_v61 = vrot.slane %v551_v57, 4  ;;  %v559_v62 = vrot.slane %v553_v58, 4 }
 0x4d0   : > { %v560_v63 = vsel %vm251_vm0, %v550_v59, %v558_v61  ;;  %v561_v0 = vsel %vm251_vm0, %v552_v60, %v559_v62 }
 0x4d1   : > { %564 = vst [vmem:[%s223_s5] sm:$0xff] %v560_v63 }
 0x4d2   : > { %565 = vst [vmem:[%s223_s5 + $0x8] sm:$0xff] %v561_v0 }
 0x4d3   : > { %899 = shalt.err (!%p896_p10)
}
 0x4d4   : > { %708 = dma.vmem_to_hbm [thread:$0]  (%p1039_p3), %s581_s7, 256, %s583_s8, %s567_s22  }
 0x4d5 PF: > { %s594_s24 = sand.u32 1, %s930_s12   ;;  %p1176_p12 = scmp.ge.s32.totalorder %s942_s15, 2 }
 0x4d6   : > { %s595_s23 = scalar_lea.sflag [#allocation4], %s594_s24 }
 0x4d7   : > { %p722_p13 = pnand %p1176_p12, %p1008_p6 }
 0x4d9   : > { %p723_p0 = pneg %p722_p13 }
 0x4db   : > { %925 = dma.done.wait (%p723_p0), %s595_s23, 256  }
 0x4dc   : > { %927 = vsyncadd (%p723_p0), %s595_s23, 4294967040  ;;  %p17_p5 = scmp.ge.s32.totalorder %s1029_s6, 4   ;;  %s1177_s12 = smov %s934_s13 }
 0x4dd   : > { %s1178_s13 = smov %s938_s14  ;;  %s1179_s14 = smov %s1045_s10 }
 0x4de   : > { %s1180_s15 = smov %s1029_s6  ;;  %19 = sbr.rel (!%p17_p5) target bundleno = 6 (0x6), region = 91 }
 0x4e3   :  { %601 = vsyncpa [#allocation3], 1 }
 0x4e4   :  { %603 = vsyncpa [#allocation3 + $0x1], 1 }
 0x4e5   :  { %604 = vsyncpa [#allocation6], 1 }
 0x4e6   :  { %605 = vsyncpa [#allocation4], 1 }
 0x4e7   :  { %607 = vsyncpa [#allocation4 + $0x1], 1 }

</bundles_post_ra>
